<compile_context>
chip_gen: v7x
topology: tpu7x:2x2x1
jax: 0.10.0
libtpu: 0.0.40
codegen_flags: <defaults>
</compile_context>

<pallas_src>
import jax
import jax.numpy as jnp
from jax.experimental import pallas as pl
from jax.experimental.pallas import tpu as pltpu


def mlp_kernel(w1_ref, b1_ref, w2_ref, b2_ref, xT_ref, oT_ref):
    # fc1: (25, 5) @ (5, TB) + (25, 1)   -> (25, TB)
    h = jnp.dot(w1_ref[...], xT_ref[...], preferred_element_type=jnp.float32)
    h = jnp.maximum(h + b1_ref[...], 0.0)          # ReLU
    # fc2: (10, 25) @ (25, TB) + (10, 1) -> (10, TB), lane-dense store
    out = jnp.dot(w2_ref[...], h, preferred_element_type=jnp.float32)
    oT_ref[...] = (out + b2_ref[...]).astype(oT_ref.dtype)


def mlp_forward(x, w1, b1, w2, b2, *, tb=1024):
    """x: (B, 5); w1: (25, 5); b1: (25,); w2: (10, 25); b2: (10,) -> (B, 10)."""
    B, in_f = x.shape
    hid = w1.shape[0]
    out_f = w2.shape[0]

    # Batch tile: multiple of 128 (lane width), no larger than needed.
    tb = min(tb, pl.cdiv(B, 128) * 128)
    tb = max(128, (tb // 128) * 128)
    Bp = pl.cdiv(B, tb) * tb
    grid = (Bp // tb,)

    # Feature-major layout with the batch on the lane axis; pad batch to Bp.
    xT = jnp.zeros((in_f, Bp), x.dtype).at[:, :B].set(x.T)
    b1c = b1.reshape(hid, 1)
    b2c = b2.reshape(out_f, 1)

    flops = 2 * B * (in_f * hid + hid * out_f)
    bytes_accessed = 4 * (B * (in_f + out_f)
                          + in_f * hid + hid + hid * out_f + out_f)

    oT = pl.pallas_call(
        mlp_kernel,
        out_shape=jax.ShapeDtypeStruct((out_f, Bp), jnp.float32),
        grid=grid,
        in_specs=[
            # Tiny weights/biases: constant block index -> fetched once,
            # VMEM-resident across all batch tiles.
            pl.BlockSpec((hid, in_f), lambda i: (0, 0)),    # w1 (25, 5)
            pl.BlockSpec((hid, 1), lambda i: (0, 0)),       # b1 (25, 1)
            pl.BlockSpec((out_f, hid), lambda i: (0, 0)),   # w2 (10, 25)
            pl.BlockSpec((out_f, 1), lambda i: (0, 0)),     # b2 (10, 1)
            # Streamed, double-buffered operand: x^T tiled over batch lanes.
            pl.BlockSpec((in_f, tb), lambda i: (0, i)),
        ],
        out_specs=pl.BlockSpec((out_f, tb), lambda i: (0, i)),
        compiler_params=pltpu.CompilerParams(
            dimension_semantics=("parallel",),      # shard batch across TCs (v7x)
            vmem_limit_bytes=32 * 1024 * 1024,      # safe on v5e/v6e/v7x
        ),
        cost_estimate=pl.CostEstimate(
            flops=flops, transcendentals=0, bytes_accessed=bytes_accessed),
    )(w1, b1c, w2, b2c, xT)

    # Back to batch-major, drop tail padding.
    return oT[:, :B].T


def init_params(key):
    """PyTorch nn.Linear default init: U(-1/sqrt(fan_in), 1/sqrt(fan_in)),
    weights stored [out_features, in_features] (PyTorch layout)."""
    k1, k2, k3, k4 = jax.random.split(key, 4)
    bound1 = 1.0 / (5.0 ** 0.5)
    bound2 = 1.0 / (25.0 ** 0.5)
    w1 = jax.random.uniform(k1, (25, 5), jnp.float32, -bound1, bound1)
    b1 = jax.random.uniform(k2, (25,), jnp.float32, -bound1, bound1)
    w2 = jax.random.uniform(k3, (10, 25), jnp.float32, -bound2, bound2)
    b2 = jax.random.uniform(k4, (10,), jnp.float32, -bound2, bound2)
    return w1, b1, w2, b2


if __name__ == "__main__":
    key = jax.random.PRNGKey(0)
    kx, kp = jax.random.split(key)

    # Small, non-multiple-of-128 batch to exercise the batch grid + tail pad.
    batch = 300
    x = jax.random.normal(kx, (batch, 5), jnp.float32)
    w1, b1, w2, b2 = init_params(kp)

    # tb=128 -> Bp=384, grid=(3,): multiple pipelined grid steps even at this
    # toy size (default tb=1024 for real batch sizes).
    out = mlp_forward(x, w1, b1, w2, b2, tb=128)
    out = jax.block_until_ready(out)

    # Reference: same math as the PyTorch module (x @ W.T + b).
    ref = jnp.maximum(x @ w1.T + b1, 0.0) @ w2.T + b2
    assert out.shape == (batch, 10)
    assert jnp.allclose(out, ref, atol=1e-5, rtol=1e-5)

    print("KERNEL_OK")
</pallas_src>

<mosaic_0001>
module attributes {stable_mosaic.version = 11 : i64} {
  func.func @mlp_kernel(%arg0: i32, %arg1: memref<25x5xf32, #tpu.memory_space<vmem>>, %arg2: memref<25x1xf32, #tpu.memory_space<vmem>>, %arg3: memref<10x25xf32, #tpu.memory_space<vmem>>, %arg4: memref<10x1xf32, #tpu.memory_space<vmem>>, %arg5: memref<5x128xf32, #tpu.memory_space<vmem>>, %arg6: memref<10x128xf32, #tpu.memory_space<vmem>>) attributes {dimension_semantics = [#tpu.dimension_semantics<parallel>], iteration_bounds = array<i64: 3>, scalar_prefetch = 0 : i64, scratch_operands = 0 : i64, tpu.core_type = #tpu.core_type<tc>, window_params = [{pipeline_mode = #tpu.pipeline_mode<synchronous>, transform_indices = @transform_0, window_bounds = array<i64: 25, 5>}, {pipeline_mode = #tpu.pipeline_mode<synchronous>, transform_indices = @transform_1, window_bounds = array<i64: 25, 1>}, {pipeline_mode = #tpu.pipeline_mode<synchronous>, transform_indices = @transform_2, window_bounds = array<i64: 10, 25>}, {pipeline_mode = #tpu.pipeline_mode<synchronous>, transform_indices = @transform_3, window_bounds = array<i64: 10, 1>}, {transform_indices = @transform_4, window_bounds = array<i64: 5, 128>}, {transform_indices = @transform_5, window_bounds = array<i64: 10, 128>}]} {
    %c0 = arith.constant 0 : index
    %c0_0 = arith.constant 0 : index
    %0 = vector.load %arg1[%c0, %c0_0] : memref<25x5xf32, #tpu.memory_space<vmem>>, vector<25x5xf32>
    %c0_1 = arith.constant 0 : index
    %c0_2 = arith.constant 0 : index
    %1 = vector.load %arg5[%c0_1, %c0_2] : memref<5x128xf32, #tpu.memory_space<vmem>>, vector<5x128xf32>
    %cst = arith.constant dense<0.000000e+00> : vector<25x128xf32>
    %2 = tpu.matmul %0, %1, %cst {dimension_numbers = #tpu.dot_dimension_numbers<[1], [0], [0], [1], [0, 0, 1, 1], [], []>} : vector<25x5xf32>, vector<5x128xf32>, vector<25x128xf32> -> vector<25x128xf32>
    %c0_3 = arith.constant 0 : index
    %c0_4 = arith.constant 0 : index
    %3 = vector.load %arg2[%c0_3, %c0_4] : memref<25x1xf32, #tpu.memory_space<vmem>>, vector<25x1xf32>
    %4 = vector.broadcast %3 : vector<25x1xf32> to vector<25x128xf32>
    %5 = arith.addf %2, %4 : vector<25x128xf32>
    %cst_5 = arith.constant 0.000000e+00 : f32
    %6 = vector.broadcast %cst_5 : f32 to vector<25x128xf32>
    %7 = arith.maximumf %5, %6 : vector<25x128xf32>
    %c0_6 = arith.constant 0 : index
    %c0_7 = arith.constant 0 : index
    %8 = vector.load %arg3[%c0_6, %c0_7] : memref<10x25xf32, #tpu.memory_space<vmem>>, vector<10x25xf32>
    %cst_8 = arith.constant dense<0.000000e+00> : vector<10x128xf32>
    %9 = tpu.matmul %8, %7, %cst_8 {dimension_numbers = #tpu.dot_dimension_numbers<[1], [0], [0], [1], [0, 0, 1, 1], [], []>} : vector<10x25xf32>, vector<25x128xf32>, vector<10x128xf32> -> vector<10x128xf32>
    %c0_9 = arith.constant 0 : index
    %c0_10 = arith.constant 0 : index
    %10 = vector.load %arg4[%c0_9, %c0_10] : memref<10x1xf32, #tpu.memory_space<vmem>>, vector<10x1xf32>
    %11 = vector.broadcast %10 : vector<10x1xf32> to vector<10x128xf32>
    %12 = arith.addf %9, %11 : vector<10x128xf32>
    %c0_11 = arith.constant 0 : index
    %c0_12 = arith.constant 0 : index
    %13 = vector.load %arg6[%c0_11, %c0_12] : memref<10x128xf32, #tpu.memory_space<vmem>>, vector<10x128xf32>
    tpu.vector_store %arg6[%c0_11, %c0_12], %12 {strides = array<i32>} : memref<10x128xf32, #tpu.memory_space<vmem>>, vector<10x128xf32>,
    return
  }
  func.func @transform_0(%arg0: i32) -> (i32, i32) {
    %c0_i32 = arith.constant 0 : i32
    %c0_i32_0 = arith.constant 0 : i32
    %c0_i32_1 = arith.constant 0 : i32
    return %c0_i32, %c0_i32_0 : i32, i32
  }
  func.func @transform_1(%arg0: i32) -> (i32, i32) {
    %c0_i32 = arith.constant 0 : i32
    %c0_i32_0 = arith.constant 0 : i32
    %c0_i32_1 = arith.constant 0 : i32
    return %c0_i32, %c0_i32_0 : i32, i32
  }
  func.func @transform_2(%arg0: i32) -> (i32, i32) {
    %c0_i32 = arith.constant 0 : i32
    %c0_i32_0 = arith.constant 0 : i32
    %c0_i32_1 = arith.constant 0 : i32
    return %c0_i32, %c0_i32_0 : i32, i32
  }
  func.func @transform_3(%arg0: i32) -> (i32, i32) {
    %c0_i32 = arith.constant 0 : i32
    %c0_i32_0 = arith.constant 0 : i32
    %c0_i32_1 = arith.constant 0 : i32
    return %c0_i32, %c0_i32_0 : i32, i32
  }
  func.func @transform_4(%arg0: i32) -> (i32, i32) {
    %c0_i32 = arith.constant 0 : i32
    %c0_i32_0 = arith.constant 0 : i32
    return %c0_i32, %arg0 : i32, i32
  }
  func.func @transform_5(%arg0: i32) -> (i32, i32) {
    %c0_i32 = arith.constant 0 : i32
    %c0_i32_0 = arith.constant 0 : i32
    return %c0_i32, %arg0 : i32, i32
  }
}

</mosaic_0001>

<bundles_post_ra>
// kernel: tpu_custom_call.1
= control target key start
LH: loop header
LB: loop body
LE: loop exit
PB: predicated region body
PF: predicated region fallthrough
CT: control target
= control target key end

     0   :  { %10 = vsyncpa [#allocation3], 0  ;;  %s881_s0 = inlined_call_operand.vmem [shape: f32[25,5], index: 0, kind: input, shape index: {}]   ;;  %s882_s1 = inlined_call_operand.vmem [shape: f32[25,1], index: 1, kind: input, shape index: {}]   ;;  %s883_s2 = inlined_call_operand.vmem [shape: f32[10,25], index: 2, kind: input, shape index: {}]   ;;  %s884_s3 = inlined_call_operand.vmem [shape: f32[10,1], index: 3, kind: input, shape index: {}]   ;;  %s885_s4 = inlined_call_operand.vmem [shape: f32[5,384], index: 4, kind: input, shape index: {}]   ;;  %s886_s5 = inlined_call_operand.hbm [shape: f32[10,384], index: 5, kind: output, shape index: {}]  }
   0x1   :  { %12 = vsyncpa [#allocation3 + $0x1], 0  ;;  %s736_s18 = smov 0   ;;  %s738_s19 = smov 0  }
   0x2   :  { %s740_s20 = smov 0   ;;  %s742_s21 = smov 0  }
   0x3 LB: > { %s757_s22 = sadd.s32 4294967295, %s698_s21   ;;  %s532_s23 = sadd.s32 4294967294, %s698_s21   ;;  %s698_s21 = sphi %s742_s21, %s892_s21   ;;  %s694_s20 = sphi %s740_s20, %s891_s20   ;;  %s690_s19 = sphi %s738_s19, %s890_s19   ;;  %s686_s18 = sphi %s736_s18, %s889_s18  }
   0x4   : > { %s761_s24 = sadd.s32 1, %s698_s21   ;;  %s135_s25 = sadd.s32 1, %s694_s20 }
   0x5   : > { %s132_s26 = ssub.s32 %s698_s21, %s761_s24  ;;  %p145_p0 = scmp.ne.s32.totalorder %s694_s20, %s690_s19 }
   0x6   : > { %p133_p1 = scmp.eq.s32.totalorder %s132_s26, 0  ;;  %p146_p2 = scmp.eq.s32.totalorder %s757_s22, 2 }
   0x7   : > { %p151_p3 = scmp.ne.s32.totalorder %s690_s19, %s686_s18  ;;  %p152_p4 = scmp.eq.s32.totalorder %s532_s23, 2 }
   0x8   : > { %s772_s27 = scalar_select %p133_p1, %s694_s20, %s135_s25  }
   0x9   : > { %p774_p5 = por %p146_p2, %p145_p0  ;;  %p778_p6 = por %p152_p4, %p151_p3 }
   0xa   : > { %p535_p7 = scmp.ge.s32.totalorder %s698_s21, 1  ;;  %p189_p8 = scmp.lt.s32.totalorder %s698_s21, 4 }
   0xc   : > { %p190_p9 = pnand %p535_p7, %p189_p8 }
   0xd   : > { %p216_p10 = scmp.lt.s32.totalorder (!%p190_p9), %s757_s22, 2  ;;  %v220_v0 = vld [vmem:[%s881_s0] sm:$0xff] (!%p190_p9)  ;;  %vm249_vm0 = vcmask (!%p190_p9), 39936   ;;  %v227_v2 = vld [vmem:[%s882_s1 + $0x10] sm:$0xff] (!%p190_p9)  ;;  %v700_v3 = vmov (!%p190_p9), 0   ;;  %vm262_vm1 = vcmask (!%p190_p9), 1044480  }
   0xe   : > { %193 = sbr.rel (%p190_p9) target bundleno = 486 (0x1e6), region = 40  ;;  %563 = vmatprep.mubr.msk.f32.mxu0 (!%p190_p9), %vm249_vm0, %v220_v0  ;;  %v225_v1 = vld [vmem:[%s882_s1] sm:$0xff] (!%p190_p9)  ;;  %634 = vset.pattern.permute.xlu0 (!%p190_p9), %v700_v3  ;;  %v226_v4 = vld [vmem:[%s882_s1 + $0x8] sm:$0xff] (!%p190_p9)  ;;  %v228_v5 = vld [vmem:[%s882_s1 + $0x18] sm:$0x1] (!%p190_p9)  ;;  %vm369_vm2 = vcmask (!%p190_p9), 203776  }
   0xf   : > { %635 = vset.pattern.permute.xlu1 (!%p190_p9), %v700_v3  ;;  %231 = vperm.xlu0 (!%p190_p9), %634, %v225_v1   ;;  %v221_v7 = vld [vmem:[%s881_s0 + $0x8] sm:$0xff] (!%p190_p9)  ;;  %v222_v8 = vld [vmem:[%s881_s0 + $0x10] sm:$0xff] (!%p190_p9)  ;;  %v357_v9 = vld [vmem:[%s884_s3] sm:$0xff] (!%p190_p9)  ;;  %vm376_vm3 = vcmask (!%p190_p9), 1040384   ;;  %vm701_vm4 = vmmov (!%p190_p9), 1   ;;  %s213_s23 = sand.u32 (!%p190_p9), 1, %s690_s19  }
  0x10   : > { %241 = vperm.xlu1 (!%p190_p9), %635, %v227_v2   ;;  %v358_v10 = vld [vmem:[%s884_s3 + $0x8] sm:$0x3] (!%p190_p9)  ;;  %v223_v11 = vld [vmem:[%s881_s0 + $0x18] sm:$0x1] (!%p190_p9)  ;;  %v355_v12 = vld [vmem:[%s883_s2] sm:$0xff] (!%p190_p9)  ;;  %s536_s25 = sshll.u32 (!%p190_p9), %s213_s23, 4 }
  0x11   : > { %577 = vmatprep.mubr.msk.f32.mxu1 (!%p190_p9), %vm369_vm2, %v355_v12  ;;  %vm585_vm5 = vmpackc.low (!%p190_p9), %vm376_vm3, %vm701_vm4  ;;  %v356_v31 = vld [vmem:[%s883_s2 + $0x8] sm:$0x3] (!%p190_p9)  ;;  %s215_s26 = scalar_lea.vmem (!%p190_p9), [#allocation2], %s536_s25  ;;  %s547_s6 = sshll.u32 (!%p190_p9), %s757_s22, 7 }
  0x12   : > { %s470_s30 = sshll.u32 (!%p190_p9), %s215_s26, 4  ;;  %s838_s9 = scalar_lea.hbm (!%p190_p9), %s886_s5, %s547_s6  ;;  %s833_s30 = int_to_ptr.vmem [resolvable:$true] %s470_s30 }
  0x13   : > { %236 = vperm.xlu0 (!%p190_p9), %634, %v226_v4   ;;  %s840_s10 = scalar_lea.sflag (!%p190_p9), [#allocation3], %s213_s23 }
  0x14   : > { %246 = vperm.xlu1 (!%p190_p9), %635, %v228_v5  }
  0x15   : > { %s217_s11 = scalar_select %p216_p10, %s757_s22, 2 }
  0x16   : > { %s636_s22 = scalar_lea.vmem %s833_s30, 256 }
  0x17   : > { %s537_s12 = sshll.u32 %s217_s11, 3  ;;  %361 = vperm.xlu0 %634, %v357_v9   ;;  %p637_p11 = scmp.ne.s32.totalorder %s833_s30, %s636_s22 }
  0x18   : > { %s219_s17 = scalar_lea.vmem %s885_s4, %s537_s12  ;;  %366 = vperm.xlu1 %635, %v358_v10   ;;  %s702_s11 = smov [#allocation2]  }
  0x19   : > { %v224_v6 = vld [vmem:[%s219_s17] sm:$0x1f]  ;;  %p638_p12 = pnand %p637_p11, %p774_p5  ;;  %s640_s12 = sshll.u32 %s702_s11, 4  ;;  %s641_s12 = int_to_ptr.vmem [resolvable:$false] %s640_s12 }
  0x1a   : > { %561 = vmatprep.subr.msk.mxu0 %vm262_vm1, %v224_v6  ;;  %s642_s13 = scalar_lea.vmem %s641_s12, 512  ;;  %p643_p0 = scmp.lt.s32.totalorder %s833_s30, %s641_s12 }
  0x1b   : > { %562 = vmatpush3.msk.msra.mxu0 %vm262_vm1, %v224_v6  ;;  %p639_p13 = pneg %p638_p12  ;;  %p644_p1 = scmp.lt.s32.totalorder %s642_s13, %s636_s22 }
  0x1c   : > { %564 = vmatmul.mubr.msk.f32.vlgmr.msra.gmra.mrb[0].mxu0 %vm249_vm0, %v221_v7 }
  0x1d   : > { %566 = vmatprep.mubr.msk.f32.mxu0 %vm249_vm0, %v222_v8  ;;  %p645_p2 = por %p644_p1, %p643_p0 }
  0x1f   : > { %p646_p3 = pnand %p645_p2, %p639_p13 }
  0x20   : > { %567 = vmatmul.mubr.msk.f32.gmra.mrb[2].mxu0 %vm249_vm0, %v223_v11 }
  0x8e   : > { %v232_v13 = vpop.permute.xlu0 %231 }
  0x8f   : > { %v242_v14 = vpop.permute.xlu1 %241 }
  0x92   : > { %v237_v15 = vpop.permute.xlu0 %236 }
  0x93   : > { %v247_v21 = vpop.permute.xlu1 %246 }
  0x96   : > { %v362_v34 = vpop.permute.xlu0 %361 }
  0x97   : > { %v367_v32 = vpop.permute.xlu1 %366 }
  0xef   : > { %v565_v16 = vpop.f32.mrb[0].mxu0 }
  0xf0   : > { %v338_v17 = vadd.f32 %v565_v16, %v237_v15  ;;  %v332_v18 = vpop.f32.mrb[1].mxu0 }
  0xf1   : > { %v333_v19 = vadd.f32 %v332_v18, %v232_v13 }
  0xf2   : > { %v352_v20 = vmax.f32 %v338_v17, 0.0 }
  0xf3   : > { %v351_v22 = vmax.f32 %v333_v19, 0.0  ;;  %v568_v23 = vpop.f32.mrb[2].mxu0 }
  0xf4   : > { %v348_v24 = vadd.f32 %v568_v23, %v247_v21  ;;  %v342_v25 = vpop.f32.mrb[3].mxu0 }
  0xf5   : > { %v343_v26 = vadd.f32 %v342_v25, %v242_v14  ;;  %v580_v27 = vpack.c.bf16 %v352_v20, %v351_v22 }
  0xf6   : > { %v354_v28 = vmax.f32 %v348_v24, 0.0 }
  0xf7   : > { %v353_v29 = vmax.f32 %v343_v26, 0.0  ;;  %581 = vmatprep.subr.bf16.mxu1 %v580_v27 }
  0xf8   : > { %583 = vmatpush3.bf16.msra.mxu1 %v580_v27 }
  0xf9   : > { %v584_v30 = vpack.c.bf16 %v354_v28, %v353_v29 }
  0xfb   : > { %586 = vmatprep.subr.msk.bf16.mxu1 %vm585_vm5, %v584_v30 }
  0xfc   : > { %589 = vmatpush3.bf16.msk.msra.mxu1 %vm585_vm5, %v584_v30 }
  0xff   : > { %578 = vmatmul.mubr.msk.f32.vlgmr.msra.gmra.mrb[0].mxu1 %vm369_vm2, %v356_v31 }
 0x1d2   : > { %v579_v33 = vpop.f32.mrb[0].mxu1 }
 0x1d3   : > { %v452_v35 = vadd.f32 %v579_v33, %v367_v32  ;;  %v446_v36 = vpop.f32.mrb[1].mxu1 }
 0x1d4   : > { %v447_v37 = vadd.f32 %v446_v36, %v362_v34 }
 0x1d5   : > { %456 = vst [vmem:[%s215_s26 + $0x8] sm:$0x3] %v452_v35 }
 0x1d6   : > { %455 = vst [vmem:[%s215_s26] sm:$0xff] %v447_v37 }
 0x1d7   : > { %649 = shalt.err (!%p646_p3)
}
 0x1d8   : > { %s650_s14 = scalar_lea.hbm %s838_s9, 256  ;;  %s654_s17 = scalar_lea.hbm %s886_s5, 768 }
 0x1d9   : > { %p651_p4 = scmp.ne.s32.totalorder %s838_s9, %s650_s14  ;;  %p655_p9 = scmp.lt.u32.totalorder %s838_s9, %s886_s5 }
 0x1da   : > { %p656_p10 = scmp.lt.u32.totalorder %s654_s17, %s650_s14  ;;  %p658_p12 = scmp.lt.u32.totalorder %s650_s14, %s838_s9 }
 0x1db   : > { %p652_p7 = pnand %p651_p4, %p774_p5 }
 0x1dc   : > { %p657_p11 = por %p656_p10, %p655_p9 }
 0x1dd   : > { %p653_p8 = pneg %p652_p7 }
 0x1de   : > { %p659_p13 = por %p658_p12, %p657_p11 }
 0x1e0   : > { %p660_p0 = pnand %p659_p13, %p653_p8 }
 0x1e2   : > { %663 = shalt.err (!%p660_p0)
}
 0x1e3   : > { %s703_s26 = smov 128   ;;  %s704_s6 = smov 384  }
 0x1e4   : > { %s705_s7 = smov 8  }
 0x1e5   : > { %590 = dma.vmem_to_hbm [thread:$0]  (%p774_p5), %s833_s30, 256, %s838_s9, %s840_s10, %s703_s26, %s704_s6, %s705_s7  }
 0x1e6 PF: > { %p596_p1 = scmp.ge.s32.totalorder %s698_s21, 2  ;;  %s485_s8 = sand.u32 1, %s686_s18  }
 0x1e7   : > { %s486_s22 = scalar_lea.sflag [#allocation3], %s485_s8 }
 0x1e8   : > { %p593_p2 = pnand %p596_p1, %p778_p6 }
 0x1ea   : > { %681 = dma.done.wait (!%p593_p2), %s486_s22, 256  }
 0x1eb   : > { %683 = vsyncadd (!%p593_p2), %s486_s22, 4294967040  ;;  %p15_p3 = scmp.ge.s32.totalorder %s761_s24, 5   ;;  %s889_s18 = smov %s690_s19 }
 0x1ec   : > { %s890_s19 = smov %s694_s20  ;;  %s891_s20 = smov %s772_s27 }
 0x1ed   : > { %s892_s21 = smov %s761_s24  ;;  %17 = sbr.rel (!%p15_p3) target bundleno = 3 (0x3), region = 75 }
 0x1f4   :  { %491 = vsyncpa [#allocation3], 1 }
 0x1f5   :  { %493 = vsyncpa [#allocation3 + $0x1], 1 }

</bundles_post_ra>
